<compile_context>
chip_gen: v7x
topology: tpu7x:2x2x1
jax: 0.10.0
libtpu: 0.0.40
codegen_flags: <defaults>
</compile_context>

<pallas_src>
import jax
import jax.numpy as jnp
from jax.experimental import pallas as pl
from jax.experimental.pallas import tpu as pltpu


def _round_up(n: int, m: int) -> int:
    return ((n + m - 1) // m) * m


def mlp_kernel(x_ref, w1_ref, b1_ref, w2_ref, b2_ref, o_ref):
    """Fused MLP tile: (x @ W1 + b1) -> ReLU -> (@ W2 + b2), all f32."""
    h = jnp.dot(x_ref[...], w1_ref[...], preferred_element_type=jnp.float32)
    h = jnp.maximum(h + b1_ref[...], 0.0)                       # bias + ReLU (VPU)
    out = jnp.dot(h, w2_ref[...], preferred_element_type=jnp.float32)
    o_ref[...] = (out + b2_ref[...]).astype(o_ref.dtype)


def mlp_forward(x, w1, b1, w2, b2, *, block_rows: int = 1024,
                out_dtype=jnp.float32):
    """Flatten input (x.view(B, -1)) and run the batch-tiled Pallas MLP.

    Weights are stored [in_features, out_features] (transposed vs. PyTorch) so
    the kernel computes x @ W + b directly on the MXU.
    """
    b = x.shape[0]
    x2d = x.reshape(b, -1)
    if x2d.dtype != jnp.float32:
        x2d = x2d.astype(jnp.float32)
    input_size = x2d.shape[1]
    hidden = w1.shape[1]
    num_classes = w2.shape[1]

    b1_2d = jnp.reshape(b1, (1, hidden)).astype(jnp.float32)
    b2_2d = jnp.reshape(b2, (1, num_classes)).astype(jnp.float32)

    # Batch tile:
    #  * small B: one full-batch tile (block dim == array dim, so no 8-row
    #    divisibility requirement).
    #  * larger B: multiple of 8 rows, capped at block_rows, and capped at
    #    ~B/2 so the grid has >= 2 steps (lets the "parallel" axis use both
    #    TensorCores on v7x).  No padding: grid uses cdiv and Pallas masks
    #    the partial tail tile.
    if b <= 256:
        tm = b
    else:
        tm = min(block_rows, _round_up(pl.cdiv(b, 2), 8))
    grid = (pl.cdiv(b, tm),)

    flops = 2 * b * (input_size * hidden + hidden * num_classes)
    bytes_accessed = (x2d.size * 4 + w1.size * 4 + w2.size * 4
                      + b1_2d.size * 4 + b2_2d.size * 4
                      + b * num_classes * jnp.dtype(out_dtype).itemsize)

    out = pl.pallas_call(
        mlp_kernel,
        out_shape=jax.ShapeDtypeStruct((b, num_classes), out_dtype),
        grid=grid,
        in_specs=[
            pl.BlockSpec((tm, input_size), lambda i: (i, 0)),       # x: streamed per batch tile
            pl.BlockSpec((input_size, hidden), lambda i: (0, 0)),   # W1: resident
            pl.BlockSpec((1, hidden), lambda i: (0, 0)),            # b1: resident
            pl.BlockSpec((hidden, num_classes), lambda i: (0, 0)),  # W2: resident
            pl.BlockSpec((1, num_classes), lambda i: (0, 0)),       # b2: resident
        ],
        out_specs=pl.BlockSpec((tm, num_classes), lambda i: (i, 0)),
        compiler_params=pltpu.CompilerParams(
            dimension_semantics=("parallel",),
        ),
        cost_estimate=pl.CostEstimate(
            flops=flops, transcendentals=0, bytes_accessed=bytes_accessed),
    )(x2d, w1, b1_2d, w2, b2_2d)

    return out


def init_params(key, input_size, hidden_width, num_classes, t):
    """normal(0, 1/hidden_width**t) init, matching Model._initialize_weights."""
    std = 1.0 / (hidden_width ** t)
    k1, k2, k3, k4 = jax.random.split(key, 4)
    w1 = jax.random.normal(k1, (input_size, hidden_width), jnp.float32) * std
    b1 = jax.random.normal(k2, (hidden_width,), jnp.float32) * std
    w2 = jax.random.normal(k3, (hidden_width, num_classes), jnp.float32) * std
    b2 = jax.random.normal(k4, (num_classes,), jnp.float32) * std
    return w1, b1, w2, b2


def _ref(x, w1, b1, w2, b2):
    x2d = x.reshape(x.shape[0], -1)
    h = jnp.maximum(x2d @ w1 + b1[None, :], 0.0)
    return h @ w2 + b2[None, :]


if __name__ == "__main__":
    # Shapes consistent with the module's forward:
    #   Model(t=1.0, hidden_layers_width=[32], input_size=20, num_classes=128)
    input_size = 20
    hidden_width = 32
    num_classes = 128
    t = 1.0

    key = jax.random.PRNGKey(0)
    kx, kx2, kp = jax.random.split(key, 3)
    w1, b1, w2, b2 = init_params(kp, input_size, hidden_width, num_classes, t)

    # Small-batch, single-tile path.
    x = jax.random.normal(kx, (8, input_size), jnp.float32)
    out = mlp_forward(x, w1, b1, w2, b2)
    jax.block_until_ready(out)
    assert out.shape == (8, num_classes)
    assert jnp.allclose(out, _ref(x, w1, b1, w2, b2), atol=2e-3, rtol=2e-3)

    # Multi-tile path with a partial tail tile (no padding, grid >= 2 steps).
    x_big = jax.random.normal(kx2, (300, input_size), jnp.float32)
    out_big = mlp_forward(x_big, w1, b1, w2, b2)
    jax.block_until_ready(out_big)
    assert out_big.shape == (300, num_classes)
    assert jnp.allclose(out_big, _ref(x_big, w1, b1, w2, b2), atol=2e-3, rtol=2e-3)

    print("KERNEL_OK")
</pallas_src>

<mosaic_0001>
module attributes {stable_mosaic.version = 11 : i64} {
  func.func @mlp_kernel(%arg0: i32, %arg1: memref<8x20xf32, #tpu.memory_space<vmem>>, %arg2: memref<20x32xf32, #tpu.memory_space<vmem>>, %arg3: memref<1x32xf32, #tpu.memory_space<vmem>>, %arg4: memref<32x128xf32, #tpu.memory_space<vmem>>, %arg5: memref<1x128xf32, #tpu.memory_space<vmem>>, %arg6: memref<8x128xf32, #tpu.memory_space<vmem>>) attributes {dimension_semantics = [#tpu.dimension_semantics<parallel>], iteration_bounds = array<i64: 1>, scalar_prefetch = 0 : i64, scratch_operands = 0 : i64, tpu.core_type = #tpu.core_type<tc>, window_params = [{transform_indices = @transform_0, window_bounds = array<i64: 8, 20>}, {pipeline_mode = #tpu.pipeline_mode<synchronous>, transform_indices = @transform_1, window_bounds = array<i64: 20, 32>}, {pipeline_mode = #tpu.pipeline_mode<synchronous>, transform_indices = @transform_2, window_bounds = array<i64: 1, 32>}, {pipeline_mode = #tpu.pipeline_mode<synchronous>, transform_indices = @transform_3, window_bounds = array<i64: 32, 128>}, {pipeline_mode = #tpu.pipeline_mode<synchronous>, transform_indices = @transform_4, window_bounds = array<i64: 1, 128>}, {transform_indices = @transform_5, window_bounds = array<i64: 8, 128>}]} {
    %c0 = arith.constant 0 : index
    %c0_0 = arith.constant 0 : index
    %0 = vector.load %arg1[%c0, %c0_0] : memref<8x20xf32, #tpu.memory_space<vmem>>, vector<8x20xf32>
    %c0_1 = arith.constant 0 : index
    %c0_2 = arith.constant 0 : index
    %1 = vector.load %arg2[%c0_1, %c0_2] : memref<20x32xf32, #tpu.memory_space<vmem>>, vector<20x32xf32>
    %cst = arith.constant dense<0.000000e+00> : vector<8x32xf32>
    %2 = tpu.matmul %0, %1, %cst {dimension_numbers = #tpu.dot_dimension_numbers<[1], [0], [0], [1], [0, 0, 1, 1], [], []>} : vector<8x20xf32>, vector<20x32xf32>, vector<8x32xf32> -> vector<8x32xf32>
    %c0_3 = arith.constant 0 : index
    %c0_4 = arith.constant 0 : index
    %3 = vector.load %arg3[%c0_3, %c0_4] : memref<1x32xf32, #tpu.memory_space<vmem>>, vector<1x32xf32>
    %4 = vector.broadcast %3 : vector<1x32xf32> to vector<8x32xf32>
    %5 = arith.addf %2, %4 : vector<8x32xf32>
    %cst_5 = arith.constant 0.000000e+00 : f32
    %6 = vector.broadcast %cst_5 : f32 to vector<8x32xf32>
    %7 = arith.maximumf %5, %6 : vector<8x32xf32>
    %c0_6 = arith.constant 0 : index
    %c0_7 = arith.constant 0 : index
    %8 = vector.load %arg4[%c0_6, %c0_7] : memref<32x128xf32, #tpu.memory_space<vmem>>, vector<32x128xf32>
    %cst_8 = arith.constant dense<0.000000e+00> : vector<8x128xf32>
    %9 = tpu.matmul %7, %8, %cst_8 {dimension_numbers = #tpu.dot_dimension_numbers<[1], [0], [0], [1], [0, 0, 1, 1], [], []>} : vector<8x32xf32>, vector<32x128xf32>, vector<8x128xf32> -> vector<8x128xf32>
    %c0_9 = arith.constant 0 : index
    %c0_10 = arith.constant 0 : index
    %10 = vector.load %arg5[%c0_9, %c0_10] : memref<1x128xf32, #tpu.memory_space<vmem>>, vector<1x128xf32>
    %11 = vector.broadcast %10 : vector<1x128xf32> to vector<8x128xf32>
    %12 = arith.addf %9, %11 : vector<8x128xf32>
    %c0_11 = arith.constant 0 : index
    %c0_12 = arith.constant 0 : index
    %13 = vector.load %arg6[%c0_11, %c0_12] : memref<8x128xf32, #tpu.memory_space<vmem>>, vector<8x128xf32>
    tpu.vector_store %arg6[%c0_11, %c0_12], %12 {strides = array<i32>} : memref<8x128xf32, #tpu.memory_space<vmem>>, vector<8x128xf32>,
    return
  }
  func.func @transform_0(%arg0: i32) -> (i32, i32) {
    %c0_i32 = arith.constant 0 : i32
    %c0_i32_0 = arith.constant 0 : i32
    return %arg0, %c0_i32 : i32, i32
  }
  func.func @transform_1(%arg0: i32) -> (i32, i32) {
    %c0_i32 = arith.constant 0 : i32
    %c0_i32_0 = arith.constant 0 : i32
    %c0_i32_1 = arith.constant 0 : i32
    return %c0_i32, %c0_i32_0 : i32, i32
  }
  func.func @transform_2(%arg0: i32) -> (i32, i32) {
    %c0_i32 = arith.constant 0 : i32
    %c0_i32_0 = arith.constant 0 : i32
    %c0_i32_1 = arith.constant 0 : i32
    return %c0_i32, %c0_i32_0 : i32, i32
  }
  func.func @transform_3(%arg0: i32) -> (i32, i32) {
    %c0_i32 = arith.constant 0 : i32
    %c0_i32_0 = arith.constant 0 : i32
    %c0_i32_1 = arith.constant 0 : i32
    return %c0_i32, %c0_i32_0 : i32, i32
  }
  func.func @transform_4(%arg0: i32) -> (i32, i32) {
    %c0_i32 = arith.constant 0 : i32
    %c0_i32_0 = arith.constant 0 : i32
    %c0_i32_1 = arith.constant 0 : i32
    return %c0_i32, %c0_i32_0 : i32, i32
  }
  func.func @transform_5(%arg0: i32) -> (i32, i32) {
    %c0_i32 = arith.constant 0 : i32
    %c0_i32_0 = arith.constant 0 : i32
    return %arg0, %c0_i32 : i32, i32
  }
}

</mosaic_0001>

<bundles_post_ra>
// kernel: tpu_custom_call.1
= control target key start
LH: loop header
LB: loop body
LE: loop exit
PB: predicated region body
PF: predicated region fallthrough
CT: control target
= control target key end

     0   :  { %10 = vsyncpa [#allocation3], 0  ;;  %s497_s0 = inlined_call_operand.hbm [shape: f32[8,20], index: 0, kind: input, shape index: {}]   ;;  %s498_s1 = inlined_call_operand.hbm [shape: f32[20,32], index: 1, kind: input, shape index: {}]   ;;  %s499_s2 = inlined_call_operand.vmem [shape: f32[1,32], index: 2, kind: input, shape index: {}]   ;;  %s500_s3 = inlined_call_operand.hbm [shape: f32[32,128], index: 3, kind: input, shape index: {}]   ;;  %s501_s4 = inlined_call_operand.vmem [shape: f32[1,128], index: 4, kind: input, shape index: {}]   ;;  %s502_s5 = inlined_call_operand.hbm [shape: f32[8,128], index: 5, kind: output, shape index: {}]  }
   0x1   :  { %11 = vsyncpa [#allocation6], 0 }
   0x2   :  { %12 = vsyncpa [#allocation4], 0  ;;  %s398_s18 = smov [#allocation5]   ;;  %s304_s22 = scalar_lea.hbm %s498_s1, 384 }
   0x3   :  { %s28_s19 = sshll.u32 %s398_s18, 4  ;;  %p305_p0 = scmp.ne.s32.totalorder %s498_s1, %s304_s22  ;;  %s29_s19 = int_to_ptr.vmem [resolvable:$true] %s28_s19 }
   0x4   :  { %p308_p1 = scmp.lt.u32.totalorder %s304_s22, %s498_s1 }
   0x6   :  { %p310_p2 = pnand %p308_p1, %p305_p0 }
   0x8   :  { %313 = shalt.err (!%p310_p2)
}
   0x9   :  { %s314_s27 = scalar_lea.vmem %s29_s19, 384  ;;  %p319_p4 = scmp.lt.s32.totalorder %s29_s19, %s29_s19 }
   0xa   :  { %p315_p3 = scmp.ne.s32.totalorder %s29_s19, %s314_s27  ;;  %p320_p5 = scmp.lt.s32.totalorder %s314_s27, %s314_s27 }
   0xc   :  { %p321_p6 = por %p320_p5, %p319_p4 }
   0xe   :  { %p322_p7 = pnand %p321_p6, %p315_p3 }
  0x10   :  { %325 = shalt.err (!%p322_p7)
}
  0x11   :  { %s399_s28 = smov 128   ;;  %s400_s29 = smov 8  }
  0x12   :  { %34 = dma.hbm_to_vmem [thread:$0]  %s498_s1, 384, %s29_s19, [#allocation6], %s399_s28, %s399_s28, %s400_s29  }
  0x13   :  { %s401_s7 = smov [#allocation2]   ;;  %s402_s9 = smov [#allocation7]  }
  0x14   :  { %s19_s8 = sshll.u32 %s401_s7, 4  ;;  %s42_s10 = sshll.u32 %s402_s9, 4  ;;  %s20_s8 = int_to_ptr.vmem [resolvable:$true] %s19_s8  ;;  %s43_s10 = int_to_ptr.vmem [resolvable:$true] %s42_s10 }
  0x15   :  { %s326_s13 = scalar_lea.hbm %s497_s0, 128 }
  0x16   :  { %p327_p8 = scmp.ne.s32.totalorder %s497_s0, %s326_s13  ;;  %p330_p9 = scmp.lt.u32.totalorder %s326_s13, %s497_s0 }
  0x18   :  { %p332_p10 = pnand %p330_p9, %p327_p8 }
  0x1a   :  { %335 = shalt.err (!%p332_p10)
}
  0x1b   :  { %s336_s1 = scalar_lea.vmem %s20_s8, 128  ;;  %p341_p12 = scmp.lt.s32.totalorder %s20_s8, %s20_s8 }
  0x1c   :  { %p337_p11 = scmp.ne.s32.totalorder %s20_s8, %s336_s1  ;;  %p342_p13 = scmp.lt.s32.totalorder %s336_s1, %s336_s1 }
  0x1e   :  { %p343_p0 = por %p342_p13, %p341_p12 }
  0x20   :  { %p344_p1 = pnand %p343_p0, %p337_p11 }
  0x22   :  { %347 = shalt.err (!%p344_p1)
}
  0x23   :  { %22 = dma.hbm_to_vmem [thread:$0]  %s497_s0, 128, %s20_s8, [#allocation3]  }
  0x24   :  { %s348_s22 = scalar_lea.hbm %s500_s3, 512 }
  0x25   :  { %p349_p2 = scmp.ne.s32.totalorder %s500_s3, %s348_s22  ;;  %p352_p3 = scmp.lt.u32.totalorder %s348_s22, %s500_s3 }
  0x27   :  { %p354_p4 = pnand %p352_p3, %p349_p2 }
  0x29   :  { %357 = shalt.err (!%p354_p4)
}
  0x2a   :  { %s358_s27 = scalar_lea.vmem %s43_s10, 512  ;;  %p363_p6 = scmp.lt.s32.totalorder %s43_s10, %s43_s10 }
  0x2b   :  { %p359_p5 = scmp.ne.s32.totalorder %s43_s10, %s358_s27  ;;  %p364_p7 = scmp.lt.s32.totalorder %s358_s27, %s358_s27 }
  0x2d   :  { %p365_p8 = por %p364_p7, %p363_p6 }
  0x2f   :  { %p366_p9 = pnand %p365_p8, %p359_p5 }
  0x31   :  { %369 = shalt.err (!%p366_p9)
}
  0x32   :  { %48 = dma.hbm_to_vmem [thread:$0]  %s500_s3, 512, %s43_s10, [#allocation6], %s399_s28, %s399_s28, %s400_s29  }
  0x33   :  { %392 = dma.done.wait [#allocation3], 128  }
  0x34   :  { %393 = vsyncadd [#allocation3], 4294967168 }
  0x35   :  { %394 = dma.done.wait [#allocation6], 896  }
  0x36   :  { %395 = vsyncadd [#allocation6], 4294966400  ;;  %v403_v0 = vmov 0.0|0.0   ;;  %vm404_vm0 = vmmov 0   ;;  %v405_v1 = vmov 0.0   ;;  %v61_v2 = vld [vmem:[#allocation5] sm:$0xff] }
  0x37   :  { %286 = vmatprep.subr.bf16.mxu0 %v403_v0  ;;  %272 = vmatprep.mubr.msk.f32.mxu0 %vm404_vm0, %v405_v1  ;;  %v62_v3 = vld [vmem:[#allocation5 + $0x8] sm:$0xff]  ;;  %v150_v5 = vld [vmem:[#allocation7] sm:$0xff]  ;;  %v151_v6 = vld [vmem:[#allocation7 + $0x8] sm:$0xff]  ;;  %vm75_vm1 = vcmask 1043456   ;;  %vm71_vm2 = vcmask 162816   ;;  %vm161_vm3 = vcmask 261120  }
  0x38   :  { %289 = vmatprep.subr.bf16.mxu1 %v403_v0  ;;  %283 = vmatprep.mubr.msk.f32.mxu1 %vm404_vm0, %v405_v1  ;;  %v287_v4 = vpack.c.bf16 %v62_v3, %v61_v2  ;;  %v290_v7 = vpack.c.bf16 %v151_v6, %v150_v5  ;;  %v63_v8 = vld [vmem:[#allocation5 + $0x10] sm:$0xf]  ;;  %v60_v9 = vld [vmem:[#allocation2] sm:$0xff]  ;;  %v152_v10 = vld [vmem:[#allocation7 + $0x10] sm:$0xff]  ;;  %s406_s7 = smov [#allocation8]  }
  0x39   :  { %v153_v11 = vld [vmem:[#allocation7 + $0x18] sm:$0xff]  ;;  %v252_v13 = vld [vmem:[%s499_s2] ss:$0 sm:$0xff]  ;;  %s242_s8 = sshll.u32 %s406_s7, 4  ;;  %s243_s8 = int_to_ptr.vmem [resolvable:$true] %s242_s8 }
  0x3a   :  { %288 = vmatpush3.bf16.msra.mxu0 %v287_v4  ;;  %291 = vmatpush3.bf16.msra.mxu1 %v290_v7  ;;  %v293_v12 = vpack.c.bf16 %v153_v11, %v152_v10  ;;  %v255_v18 = vld [vmem:[%s501_s4] ss:$0 sm:$0xff]  ;;  %s370_s9 = scalar_lea.vmem %s243_s8, 128  ;;  %p375_p11 = scmp.lt.s32.totalorder %s243_s8, %s243_s8 }
  0x3b   :  { %270 = vmatprep.subr.mxu0 %v405_v1  ;;  %292 = vmatprep.subr.bf16.mxu1 %v403_v0  ;;  %p371_p10 = scmp.ne.s32.totalorder %s243_s8, %s370_s9  ;;  %p376_p12 = scmp.lt.s32.totalorder %s370_s9, %s370_s9 }
  0x3d   :  { %p377_p13 = por %p376_p12, %p375_p11 }
  0x3e   :  { %271 = vmatpush3.msk.msra.mxu0 %vm75_vm1, %v63_v8  ;;  %294 = vmatpush3.bf16.msra.mxu1 %v293_v12 }
  0x3f   :  { %273 = vmatmul.mubr.msk.f32.vlgmr.msra.gmra.mrb[0].mxu0 %vm71_vm2, %v60_v9  ;;  %p378_p0 = pnand %p377_p13, %p371_p10 }
 0x112   :  { %v145_v14 = vpop.f32.mrb[0].mxu0 }
 0x113   :  { %v146_v15 = vadd.f32 %v252_v13, %v145_v14  ;;  %v274_v16 = vpop.f32.mrb[1].mxu0 }
 0x115   :  { %v149_v17 = vmax.f32 %v146_v15, 0.0 }
 0x117   :  { %284 = vmatmul.mubr.msk.f32.vlgmr.msra.gmra.mrb[0].mxu1 %vm161_vm3, %v149_v17 }
 0x1ea   :  { %v231_v19 = vpop.f32.mrb[0].mxu1 }
 0x1eb   :  { %v232_v20 = vadd.f32 %v255_v18, %v231_v19  ;;  %v285_v21 = vpop.f32.mrb[1].mxu1 }
 0x1ed   :  { %235 = vst [vmem:[#allocation8] sm:$0xff] %v232_v20 }
 0x1ee   :  { %381 = shalt.err (!%p378_p0)
}
 0x1ef   :  { %s382_s11 = scalar_lea.hbm %s502_s5, 128 }
 0x1f0   :  { %p383_p1 = scmp.ne.s32.totalorder %s502_s5, %s382_s11  ;;  %p386_p2 = scmp.lt.u32.totalorder %s382_s11, %s502_s5 }
 0x1f2   :  { %p388_p3 = pnand %p386_p2, %p383_p1 }
 0x1f4   :  { %391 = shalt.err (!%p388_p3)
}
 0x1f5   :  { %245 = dma.vmem_to_hbm [thread:$0]  %s243_s8, 128, %s502_s5, [#allocation4]  }
 0x1f6   :  { %396 = dma.done.wait [#allocation4], 128  }
 0x1f7   :  { %397 = vsyncadd [#allocation4], 4294967168 }
 0x1f8   :  { %249 = vsyncpa [#allocation3], 1 }
 0x1f9   :  { %250 = vsyncpa [#allocation6], 1 }
 0x1fa   :  { %251 = vsyncpa [#allocation4], 1 }

</bundles_post_ra>
